<compile_context>
chip_gen: v5e
topology: v5e:2x2
jax: 0.10.0
libtpu: 0.0.40
codegen_flags: <defaults>
</compile_context>

<pallas_src>
import functools

import jax
import jax.numpy as jnp
from jax.experimental import pallas as pl
from jax.experimental.pallas import tpu as pltpu

_MIB = 1024 * 1024


def _rope_kernel(x_ref, cos_ref, sin_e_ref, sin_o_ref, o_ref, *, n_heads, compute_dtype):
    """Apply interleaved RoPE to one tile.

    Tile layouts (chosen statically by the wrapper):
      * head-axis: x tile (tile_s, n_h, h_d); (tile_s, h_d) tables broadcast over
        the head (sublane) axis -- no materialized lane concat.
      * slab:      x tile (tile_s, n_h*h_d); tables lane-tiled across heads.
    Parity and sign are folded into the tables, so
      out = x*cos + roll(x, -1)*sin_e + roll(x, +1)*sin_o
    needs no iota / compare / select on the VPU.
    """
    x = x_ref[...].astype(compute_dtype)
    cos = cos_ref[...].astype(compute_dtype)
    sin_e = sin_e_ref[...].astype(compute_dtype)
    sin_o = sin_o_ref[...].astype(compute_dtype)

    lane_axis = x.ndim - 1
    if x.ndim == 3:
        # (tile_s, n_h, h_d): natural sublane broadcast across heads.
        cos, sin_e, sin_o = cos[:, None, :], sin_e[:, None, :], sin_o[:, None, :]
    elif n_heads > 1:
        # (tile_s, W) slab: tile tables across the head groups along lanes.
        cos = jnp.tile(cos, (1, n_heads))
        sin_e = jnp.tile(sin_e, (1, n_heads))
        sin_o = jnp.tile(sin_o, (1, n_heads))

    w = x.shape[lane_axis]
    # Pair swap along lanes (jnp.roll semantics: roll(x, s)[d] == x[(d - s) % w]).
    # Wrap-around lanes are never selected: sin_e is zero on odd lanes and sin_o
    # is zero on even lanes, so only in-pair neighbours contribute.
    x_next = pltpu.roll(x, w - 1, lane_axis)   # x[(d + 1) % w]
    x_prev = pltpu.roll(x, 1, lane_axis)       # x[(d - 1) % w]

    # out_even = x_e*cos - x_o*sin ; out_odd = x_o*cos + x_e*sin
    o_ref[...] = (x * cos + x_next * sin_e + x_prev * sin_o).astype(o_ref.dtype)


def _rope_pallas(x, cos, sin_e, sin_o, *, low_precision=False, donate_x=False,
                 vmem_budget_bytes=28 * _MIB):
    b, s, n_h, h_d = x.shape
    w = n_h * h_d
    itemsize = x.dtype.itemsize
    per_batch_tables = cos.ndim == 3          # input_pos path: tables are (b, s, h_d)

    compute_dtype = x.dtype if low_precision else jnp.float32
    cbytes = itemsize if low_precision else 4

    # Head-axis layout only when the head dim packs sublanes densely.
    use_head_axis = (n_h % 8 == 0)

    # ---- Tile sizing: biggest seq tile whose working set fits the budget.
    #   2x double-buffered in + out tiles (x dtype),
    #   ~5 compute-dtype temporaries (x upcast, rolls, products)
    #     (+3 lane-tiled table copies on the slab path),
    #   2x double-buffered blocks of the three (tile_s, h_d) f32 tables.
    temp_factor = 5 if use_head_axis else 8
    per_row = (2 * 2 * w * itemsize) + (temp_factor * w * cbytes) + (2 * 3 * h_d * 4)
    rows = max(8, vmem_budget_bytes // per_row)
    rows = min(rows, 4096)
    tile_s = s if s <= rows else (rows // 8) * 8

    footprint = per_row * tile_s
    vmem_limit = int(min(48 * _MIB, max(16 * _MIB, footprint * 5 // 4 + 2 * _MIB)))

    # Batch innermost -> table block index constant over the inner loop (no re-fetch);
    # seq-tile axis "parallel" so v7x's two TCs split over seq tiles.
    grid = (pl.cdiv(s, tile_s), b)

    if use_head_axis:
        x_in = x
        x_spec = pl.BlockSpec((None, tile_s, n_h, h_d), lambda si, bi: (bi, si, 0, 0))
    else:
        # x must be contiguous in [b, s, n_h, h_d] layout for this to be metadata-only.
        x_in = x.reshape(b, s, w)
        x_spec = pl.BlockSpec((None, tile_s, w), lambda si, bi: (bi, si, 0))

    if per_batch_tables:
        t_spec = pl.BlockSpec((None, tile_s, h_d), lambda si, bi: (bi, si, 0))
    else:
        t_spec = pl.BlockSpec((tile_s, h_d), lambda si, bi: (si, 0))

    kernel = functools.partial(_rope_kernel, n_heads=n_h, compute_dtype=compute_dtype)
    call_kwargs = {}
    if donate_x:
        call_kwargs["input_output_aliases"] = {0: 0}

    out = pl.pallas_call(
        kernel,
        out_shape=jax.ShapeDtypeStruct(x_in.shape, x.dtype),
        grid_spec=pltpu.PrefetchScalarGridSpec(
            num_scalar_prefetch=0,
            grid=grid,
            in_specs=[x_spec, t_spec, t_spec, t_spec],
            out_specs=x_spec,
        ),
        compiler_params=pltpu.CompilerParams(
            dimension_semantics=("parallel", "arbitrary"),
            vmem_limit_bytes=vmem_limit,
        ),
        **call_kwargs,
    )(x_in, cos, sin_e, sin_o)
    return out.reshape(b, s, n_h, h_d)


class RotaryPositionalEmbeddings:
    """JAX/Pallas port of the PyTorch RotaryPositionalEmbeddings module."""

    def __init__(self, dim: int, max_seq_len: int, base: int):
        assert dim % 2 == 0, "head dim must be even for RoPE"
        self.dim = dim
        self.max_seq_len = max_seq_len
        self.base = base

        theta = base ** (-(jnp.arange(0, dim, 2, dtype=jnp.float32) / dim))  # (dim//2,)
        seq_idx = jnp.arange(max_seq_len, dtype=jnp.float32)
        idx_theta = seq_idx[:, None] * theta[None, :]                        # (L, dim//2)
        cos = jnp.cos(idx_theta)
        sin = jnp.sin(idx_theta)
        # Same cache layout as the torch module (used by the pure-JAX reference).
        self.cache = jnp.stack([cos, sin], axis=-1)                          # (L, dim//2, 2)
        # Kernel tables, interleaved layout, sign AND parity folded in:
        #   cos_tab[p, 2j] = cos_tab[p, 2j+1] = cos(p*theta_j)
        #   sin_e[p, 2j]   = -sin(p*theta_j),  sin_e[p, 2j+1] = 0
        #   sin_o[p, 2j]   = 0,                sin_o[p, 2j+1] = +sin(p*theta_j)
        zeros = jnp.zeros_like(sin)
        self._cos_tab = jnp.repeat(cos, 2, axis=-1)                          # (L, dim)
        self._sin_e_tab = jnp.stack([-sin, zeros], axis=-1).reshape(max_seq_len, dim)
        self._sin_o_tab = jnp.stack([zeros, sin], axis=-1).reshape(max_seq_len, dim)

    def __call__(self, x: jax.Array, *, input_pos=None,
                 low_precision: bool = False, donate_x: bool = False) -> jax.Array:
        b, s, n_h, h_d = x.shape
        assert h_d == self.dim

        if input_pos is None:
            cos = self._cos_tab[:s]                            # (s, h_d) tiny slice
            sin_e = self._sin_e_tab[:s]
            sin_o = self._sin_o_tab[:s]
        else:
            # TODO(synk): gather table rows inside the kernel (scalar-prefetched
            # input_pos + pl.Element / in-kernel take) to avoid materializing and
            # re-reading (b, s, h_d) f32 tables through HBM on this path.
            cos = jnp.take(self._cos_tab, input_pos, axis=0)
            sin_e = jnp.take(self._sin_e_tab, input_pos, axis=0)
            sin_o = jnp.take(self._sin_o_tab, input_pos, axis=0)

        return _rope_pallas(x, cos, sin_e, sin_o,
                            low_precision=low_precision, donate_x=donate_x)


def rope_ref(x: jax.Array, cache: jax.Array, *, input_pos=None) -> jax.Array:
    """Pure-JAX reference matching the PyTorch forward exactly."""
    b, s, n_h, h_d = x.shape
    rc = cache[:s] if input_pos is None else cache[input_pos]
    xf = x.astype(jnp.float32).reshape(b, s, n_h, h_d // 2, 2)
    rc = rc.reshape(-1, s, 1, h_d // 2, 2).astype(jnp.float32)
    x0, x1 = xf[..., 0], xf[..., 1]
    c, sn = rc[..., 0], rc[..., 1]
    out = jnp.stack([x0 * c - x1 * sn, x1 * c + x0 * sn], axis=-1)
    return out.reshape(b, s, n_h, h_d).astype(x.dtype)


if __name__ == "__main__":
    key = jax.random.PRNGKey(0)
    k1, k2 = jax.random.split(key)
    max_seq_len, base = 32, 50000

    # Case 1: few heads (n_h % 8 != 0) -> lane-dense slab layout, default positions.
    b, s, n_h, h_d = 2, 8, 2, 128
    rope = RotaryPositionalEmbeddings(dim=h_d, max_seq_len=max_seq_len, base=base)
    x = jax.random.normal(k1, (b, s, n_h, h_d), dtype=jnp.float32)
    y = rope(x)
    jax.block_until_ready(y)
    y_ref = rope_ref(x, rope.cache)
    assert y.shape == x.shape and y.dtype == x.dtype
    assert jnp.allclose(y, y_ref, atol=1e-5, rtol=1e-5), "mismatch (slab, input_pos=None)"

    # Case 2: explicit position ids ([b, s]) -> per-batch tables.
    input_pos = (jnp.arange(s, dtype=jnp.int32)[None, :]
                 + jnp.array([[0], [5]], dtype=jnp.int32))  # max pos 12 < max_seq_len
    y2 = rope(x, input_pos=input_pos)
    jax.block_until_ready(y2)
    y2_ref = rope_ref(x, rope.cache, input_pos=input_pos)
    assert jnp.allclose(y2, y2_ref, atol=1e-5, rtol=1e-5), "mismatch (slab, input_pos)"

    # Case 3: n_h multiple of 8 -> head-axis layout with sublane broadcast.
    b3, s3, n_h3, h_d3 = 1, 16, 8, 128
    rope3 = RotaryPositionalEmbeddings(dim=h_d3, max_seq_len=max_seq_len, base=base)
    x3 = jax.random.normal(k2, (b3, s3, n_h3, h_d3), dtype=jnp.float32)
    y3 = rope3(x3)
    jax.block_until_ready(y3)
    y3_ref = rope_ref(x3, rope3.cache)
    assert jnp.allclose(y3, y3_ref, atol=1e-5, rtol=1e-5), "mismatch (head-axis layout)"

    print("KERNEL_OK")
</pallas_src>

<mosaic_0001>
module attributes {stable_mosaic.version = 11 : i64} {
  func.func @_rope_kernel(%arg0: i32, %arg1: i32, %arg2: memref<1x8x256xf32, #tpu.memory_space<vmem>>, %arg3: memref<8x128xf32, #tpu.memory_space<vmem>>, %arg4: memref<8x128xf32, #tpu.memory_space<vmem>>, %arg5: memref<8x128xf32, #tpu.memory_space<vmem>>, %arg6: memref<1x8x256xf32, #tpu.memory_space<vmem>>) attributes {dimension_semantics = [#tpu.dimension_semantics<parallel>, #tpu.dimension_semantics<arbitrary>], iteration_bounds = array<i64: 1, 2>, scalar_prefetch = 0 : i64, scratch_operands = 0 : i64, tpu.core_type = #tpu.core_type<tc>, window_params = [{transform_indices = @transform_0, window_bounds = array<i64: 1, 8, 256>}, {transform_indices = @transform_1, window_bounds = array<i64: 8, 128>}, {transform_indices = @transform_2, window_bounds = array<i64: 8, 128>}, {transform_indices = @transform_3, window_bounds = array<i64: 8, 128>}, {transform_indices = @transform_4, window_bounds = array<i64: 1, 8, 256>}]} {
    %c0 = arith.constant 0 : index
    %c0_0 = arith.constant 0 : index
    %c0_1 = arith.constant 0 : index
    %0 = vector.load %arg2[%c0, %c0_0, %c0_1] : memref<1x8x256xf32, #tpu.memory_space<vmem>>, vector<1x8x256xf32>
    %1 = vector.shape_cast %0 : vector<1x8x256xf32> to vector<8x256xf32>
    %c0_2 = arith.constant 0 : index
    %c0_3 = arith.constant 0 : index
    %2 = vector.load %arg3[%c0_2, %c0_3] : memref<8x128xf32, #tpu.memory_space<vmem>>, vector<8x128xf32>
    %c0_4 = arith.constant 0 : index
    %c0_5 = arith.constant 0 : index
    %3 = vector.load %arg4[%c0_4, %c0_5] : memref<8x128xf32, #tpu.memory_space<vmem>>, vector<8x128xf32>
    %c0_6 = arith.constant 0 : index
    %c0_7 = arith.constant 0 : index
    %4 = vector.load %arg5[%c0_6, %c0_7] : memref<8x128xf32, #tpu.memory_space<vmem>>, vector<8x128xf32>
    %5 = tpu.concatenate %2, %2 in 1 : vector<8x128xf32>, vector<8x128xf32> -> vector<8x256xf32>
    %6 = tpu.concatenate %3, %3 in 1 : vector<8x128xf32>, vector<8x128xf32> -> vector<8x256xf32>
    %7 = tpu.concatenate %4, %4 in 1 : vector<8x128xf32>, vector<8x128xf32> -> vector<8x256xf32>
    %c255_i32 = arith.constant 255 : i32
    %8 = tpu.dynamic_rotate %1 by %c255_i32 dim 1 : vector<8x256xf32>, i32 -> vector<8x256xf32>
    %c1_i32 = arith.constant 1 : i32
    %9 = tpu.dynamic_rotate %1 by %c1_i32 dim 1 : vector<8x256xf32>, i32 -> vector<8x256xf32>
    %10 = arith.mulf %1, %5 : vector<8x256xf32>
    %11 = arith.mulf %8, %6 : vector<8x256xf32>
    %12 = arith.addf %10, %11 : vector<8x256xf32>
    %13 = arith.mulf %9, %7 : vector<8x256xf32>
    %14 = arith.addf %12, %13 : vector<8x256xf32>
    %c0_8 = arith.constant 0 : index
    %c0_9 = arith.constant 0 : index
    %c0_10 = arith.constant 0 : index
    %15 = vector.load %arg6[%c0_8, %c0_9, %c0_10] : memref<1x8x256xf32, #tpu.memory_space<vmem>>, vector<1x8x256xf32>
    %16 = vector.shape_cast %15 : vector<1x8x256xf32> to vector<8x256xf32>
    %17 = vector.shape_cast %14 : vector<8x256xf32> to vector<1x8x256xf32>
    tpu.vector_store %arg6[%c0_8, %c0_9, %c0_10], %17 {strides = array<i32>} : memref<1x8x256xf32, #tpu.memory_space<vmem>>, vector<1x8x256xf32>,
    return
  }
  func.func @transform_0(%arg0: i32, %arg1: i32) -> (i32, i32, i32) {
    %c0_i32 = arith.constant 0 : i32
    %c0_i32_0 = arith.constant 0 : i32
    return %arg1, %arg0, %c0_i32 : i32, i32, i32
  }
  func.func @transform_1(%arg0: i32, %arg1: i32) -> (i32, i32) {
    %c0_i32 = arith.constant 0 : i32
    %c0_i32_0 = arith.constant 0 : i32
    return %arg0, %c0_i32 : i32, i32
  }
  func.func @transform_2(%arg0: i32, %arg1: i32) -> (i32, i32) {
    %c0_i32 = arith.constant 0 : i32
    %c0_i32_0 = arith.constant 0 : i32
    return %arg0, %c0_i32 : i32, i32
  }
  func.func @transform_3(%arg0: i32, %arg1: i32) -> (i32, i32) {
    %c0_i32 = arith.constant 0 : i32
    %c0_i32_0 = arith.constant 0 : i32
    return %arg0, %c0_i32 : i32, i32
  }
  func.func @transform_4(%arg0: i32, %arg1: i32) -> (i32, i32, i32) {
    %c0_i32 = arith.constant 0 : i32
    %c0_i32_0 = arith.constant 0 : i32
    return %arg1, %arg0, %c0_i32 : i32, i32, i32
  }
}

</mosaic_0001>

<bundles_post_ra>
// kernel: tpu_custom_call.1
= control target key start
LH: loop header
LB: loop body
LE: loop exit
PB: predicated region body
PF: predicated region fallthrough
CT: control target
= control target key end

     0   :  { %9 = vsyncpa [#allocation3], 0  ;;  %s993_s0 = inlined_call_operand.hbm [shape: f32[2,8,256], index: 0, kind: input, shape index: {}]   ;;  %s994_s1 = inlined_call_operand.hbm [shape: f32[8,128], index: 1, kind: input, shape index: {}]   ;;  %s995_s2 = inlined_call_operand.hbm [shape: f32[8,128], index: 2, kind: input, shape index: {}]   ;;  %s996_s3 = inlined_call_operand.hbm [shape: f32[8,128], index: 3, kind: input, shape index: {}]   ;;  %s997_s4 = inlined_call_operand.hbm [shape: f32[2,8,256], index: 4, kind: output, shape index: {}]  }
   0x1   :  { %11 = vsyncpa [#allocation3 + $0x1], 0 }
   0x2   :  { %12 = vsyncpa [#allocation6], 0 }
   0x3   :  { %13 = vsyncpa [#allocation9], 0 }
   0x4   :  { %14 = vsyncpa [#allocation4], 0 }
   0x5   :  { %16 = vsyncpa [#allocation4 + $0x1], 0  ;;  %s830_s15 = smov 0   ;;  %s832_s16 = smov 0  }
   0x6   :  { %s834_s17 = smov 0   ;;  %s836_s18 = smov 0  }
   0x7   :  { %s838_s19 = smov 0   ;;  %s840_s20 = smov 0  }
   0x8 LB: > { %s470_s21 = sadd.s32 4294967295, %s798_s20   ;;  %s471_s22 = sadd.s32 4294967294, %s798_s20   ;;  %s798_s20 = sphi %s840_s20, %s22_s20   ;;  %s794_s19 = sphi %s838_s19, %s1009_s19   ;;  %s790_s18 = sphi %s836_s18, %s1008_s18   ;;  %s786_s17 = sphi %s834_s17, %s1007_s17   ;;  %s782_s16 = sphi %s832_s16, %s1006_s16   ;;  %s778_s15 = sphi %s830_s15, %s1005_s15  }
   0x9   : > { %p56_p0 = scmp.ne.s32.totalorder %s782_s16, %s778_s15  ;;  %p864_p1 = scmp.eq.s32.totalorder %s470_s21, 0 }
   0xa   : > { %p868_p2 = scmp.eq.s32.totalorder %s470_s21, 1  ;;  %p166_p3 = scmp.eq.s32.totalorder %s471_s22, 1 }
   0xb   : > { %p874_p4 = por %p864_p1, %p56_p0  ;;  %p472_p5 = scmp.ge.s32.totalorder %s798_s20, 1 }
   0xc   : > { %p879_p6 = por %p166_p3, %p56_p0  ;;  %p173_p7 = scmp.lt.s32.totalorder %s798_s20, 3 }
   0xd   : > { %s187_s29 = sshll.u32 %s994_s1, 4  ;;  %p476_p9 = scmp.ge.s32.totalorder %s798_s20, 2  ;;  %s188_s29 = int_to_ptr.hbm [resolvable:$true] %s187_s29 }
   0xe   : > { %p887_p8 = pnand %p472_p5, %p173_p7  ;;  %s800_s5 = smov [#allocation5]  }
   0xf   : > { %s189_s6 = sshll.u32 %s800_s5, 4  ;;  %s201_s9 = sshll.u32 %s995_s2, 4  ;;  %s190_s6 = int_to_ptr.vmem [resolvable:$true] %s189_s6  ;;  %s202_s9 = int_to_ptr.hbm [resolvable:$true] %s201_s9 }
  0x10   : > { %p509_p10 = pneg %p887_p8  ;;  %s215_s12 = sshll.u32 %s996_s3, 4  ;;  %s216_s12 = int_to_ptr.hbm [resolvable:$true] %s215_s12 }
  0x11   : > { %s801_s13 = smov [#allocation7]   ;;  %s802_s21 = smov [#allocation8]  }
  0x12   : > { %p510_p11 = pnand %p509_p10, %p864_p1  ;;  %s203_s14 = sshll.u32 %s801_s13, 4  ;;  %s204_s14 = int_to_ptr.vmem [resolvable:$true] %s203_s14 }
  0x13   : > { %s217_s22 = sshll.u32 %s802_s21, 4  ;;  %s31_s27 = sadd.s32 1, %s794_s19  ;;  %s218_s22 = int_to_ptr.vmem [resolvable:$true] %s217_s22 }
  0x14   : > { %512 = dma.hbm_to_vmem [thread:$0]  (!%p510_p11), %s188_s29, 128, %s190_s6, [#allocation6]  }
  0x15   : > { %515 = dma.hbm_to_vmem [thread:$0]  (!%p510_p11), %s202_s9, 128, %s204_s14, [#allocation6]  }
  0x16   : > { %518 = dma.hbm_to_vmem [thread:$0]  (!%p510_p11), %s216_s12, 128, %s218_s22, [#allocation9]  }
  0x17   : > { %p32_p12 = scmp.ge.s32.totalorder %s31_s27, 2  ;;  %s43_s28 = sadd.s32 1, %s786_s17 }
  0x18   : > { %p50_p13 = scmp.ne.s32.totalorder %s786_s17, %s782_s16  ;;  %p51_p0 = scmp.eq.s32.totalorder %s798_s20, 0 }
  0x19   : > { %s1011_s27 = smov (%p32_p12, %s31_s27), 0  ;;  %p530_p7 = scmp.lt.s32.totalorder %s798_s20, 2 }
  0x1a   : > { %p909_p3 = por %p51_p0, %p50_p13  ;;  %p915_p5 = por %p868_p2, %p50_p13 }
  0x1b   : > { %s38_s6 = ssub.s32 %s794_s19, %s1011_s27  ;;  %s228_s7 = sand.u32 1, %s786_s17  }
  0x1c   : > { %p41_p10 = scmp.eq.s32.totalorder %s38_s6, 0  ;;  %s477_s8 = sshll.u32 %s228_s7, 4 }
  0x1d   : > { %s491_s10 = sshll.u32 %s794_s19, 4  ;;  %s232_s14 = scalar_lea.vmem [#allocation2], %s477_s8 }
  0x1e   : > { %s924_s9 = scalar_select %p41_p10, %s786_s17, %s43_s28  }
  0x1f   : > { %s239_s13 = scalar_lea.hbm %s993_s0, %s491_s10  ;;  %s243_s21 = sshll.u32 %s232_s14, 4  ;;  %s244_s21 = int_to_ptr.vmem [resolvable:$true] %s243_s21 }
  0x20   : > { %s241_s24 = sshll.u32 %s239_s13, 4  ;;  %p520_p2 = pnand %p530_p7, %p909_p3  ;;  %s242_s24 = int_to_ptr.hbm [resolvable:$true] %s241_s24 }
  0x21   : > { %s229_s22 = scalar_lea.sflag [#allocation3], %s228_s7  ;;  %252 = sbr.rel (%p887_p8) target bundleno = 178 (0xb2), region = 36 }
  0x22   : > { %522 = dma.hbm_to_vmem [thread:$0]  (!%p520_p2), %s242_s24, 256, %s244_s21, %s229_s22  }
  0x23   : > { %s935_s28 = sand.u32 (!%p887_p8), 1, %s782_s16  }
  0x24   : > { %s481_s6 = sshll.u32 (!%p887_p8), %s935_s28, 4  ;;  %s255_s8 = scalar_lea.sflag (!%p887_p8), [#allocation3], %s935_s28 }
  0x25   : > { %s258_s10 = scalar_lea.vmem (!%p887_p8), [#allocation2], %s481_s6 }
  0x26   : > { %761 = dma.done.wait (%p874_p4), %s255_s8, 256  }
  0x27   : > { %763 = vsyncadd (%p874_p4), %s255_s8, 4294967040 }
  0x28   : > { %765 = dma.done.wait (%p864_p1), [#allocation6], 256  }
  0x29   : > { %767 = vsyncadd (%p864_p1), [#allocation6], 4294967040 }
  0x2a   : > { %769 = dma.done.wait (%p864_p1), [#allocation9], 128  }
  0x2b   : > { %771 = vsyncadd (%p864_p1), [#allocation9], 4294967168  ;;  %v299_v0 = vld [vmem:[%s258_s10] sm:$0xff]  ;;  %s803_s30 = smov 1   ;;  %s804_s29 = smov 127   ;;  %v300_v1 = vld [vmem:[%s258_s10 + $0x8] sm:$0xff]  ;;  %v308_v2 = vlaneseq }
  0x2c   : > { %313 = vrot.lane.b32.xlu1 %v299_v0, %s803_s30  ;;  %304 = vrot.lane.b32.xlu0 %v299_v0, %s804_s29  ;;  %v301_v6 = vld [vmem:[#allocation5] sm:$0xff]  ;;  %s492_s25 = sshll.u32 %s790_s18, 4  ;;  %v302_v7 = vld [vmem:[#allocation7] sm:$0xff]  ;;  %v303_v12 = vld [vmem:[#allocation8] sm:$0xff]  ;;  %s298_s18 = scalar_lea.vmem [#allocation10], %s481_s6 }
  0x2d   : > { %v309_v5 = vand.u32 127, %v308_v2  ;;  %v320_v8 = vmul.f32 %v301_v6, %v299_v0  ;;  %v321_v9 = vmul.f32 %v301_v6, %v300_v1  ;;  %s346_s11 = scalar_lea.hbm %s997_s4, %s492_s25  ;;  %s348_s12 = sshll.u32 %s298_s18, 4  ;;  %s349_s12 = int_to_ptr.vmem [resolvable:$true] %s348_s12 }
  0x2e   : > { %s350_s13 = sshll.u32 %s346_s11, 4  ;;  %s333_s14 = scalar_lea.sflag [#allocation4], %s935_s28  ;;  %s351_s13 = int_to_ptr.hbm [resolvable:$true] %s350_s13 }
  0x2f   : > { %vm317_vm0 = vcmp.lt.s32.totalorder %v309_v5, 1  ;;  %vm310_vm1 = vcmp.lt.s32.totalorder %v309_v5, 127  ;;  %s722_s21 = sshra.s32 %s351_s13, 4  ;;  %s728_s6 = scalar_lea.hbm %s997_s4, 32  ;;  %s723_s21 = int_to_ptr.hbm [resolvable:$true] %s722_s21 }
  0x30   : > { %s724_s24 = scalar_lea.hbm %s723_s21, 16  ;;  %p729_p11 = scmp.lt.s32.totalorder %s723_s21, %s997_s4 }
  0x31   : > { %p725_p1 = scmp.ne.s32.totalorder %s723_s21, %s724_s24  ;;  %p730_p12 = scmp.lt.s32.totalorder %s728_s6, %s724_s24 }
  0x33   : > { %p726_p4 = pnand %p725_p1, %p915_p5  ;;  %p731_p13 = por %p730_p12, %p729_p11 }
  0x34   : > { %315 = vrot.lane.b32.xlu1 %v300_v1, %s803_s30  ;;  %306 = vrot.lane.b32.xlu0 %v300_v1, %s804_s29 }
  0x35   : > { %p727_p8 = pneg %p726_p4 }
  0x37   : > { %p732_p0 = pnand %p731_p13, %p727_p8 }
  0x9e   : > { %v314_v3 = vpop.permute.xlu1 %313  ;;  %v305_v4 = vpop.permute.xlu0 %304 }
  0xa6   : > { %v316_v10 = vpop.permute.xlu1 %315  ;;  %v307_v11 = vpop.permute.xlu0 %306 }
  0xa7   : > { %v318_v13 = vsel %vm317_vm0, %v314_v3, %v316_v10  ;;  %v319_v14 = vsel %vm317_vm0, %v316_v10, %v314_v3  ;;  %v311_v15 = vsel %vm310_vm1, %v305_v4, %v307_v11  ;;  %v312_v16 = vsel %vm310_vm1, %v307_v11, %v305_v4 }
  0xa8   : > { %v322_v17 = vmul.f32 %v311_v15, %v302_v7  ;;  %v323_v18 = vmul.f32 %v312_v16, %v302_v7  ;;  %v326_v19 = vmul.f32 %v319_v14, %v303_v12  ;;  %v327_v20 = vmul.f32 %v318_v13, %v303_v12 }
  0xaa   : > { %v324_v21 = vadd.f32 %v322_v17, %v320_v8  ;;  %v325_v22 = vadd.f32 %v323_v18, %v321_v9 }
  0xac   : > { %v328_v23 = vadd.f32 %v326_v19, %v324_v21  ;;  %v329_v24 = vadd.f32 %v327_v20, %v325_v22 }
  0xae   : > { %330 = vst [vmem:[%s298_s18] sm:$0xff] %v328_v23 }
  0xaf   : > { %331 = vst [vmem:[%s298_s18 + $0x8] sm:$0xff] %v329_v24 }
  0xb0   : > { %735 = shalt.err (!%p732_p0)
}
  0xb1   : > { %507 = dma.vmem_to_hbm [thread:$0]  (%p915_p5), %s349_s12, 256, %s351_s13, %s333_s14  }
  0xb2 PF: > { %s362_s28 = sand.u32 1, %s778_s15   ;;  %p524_p3 = pnand %p476_p9, %p879_p6 }
  0xb3   : > { %s363_s29 = scalar_lea.sflag [#allocation4], %s362_s28 }
  0xb4   : > { %p525_p7 = pneg %p524_p3 }
  0xb6   : > { %773 = dma.done.wait (%p525_p7), %s363_s29, 256  }
  0xb7   : > { %775 = vsyncadd (%p525_p7), %s363_s29, 4294967040  ;;  %s22_s20 = sadd.s32 1, %s798_s20   ;;  %s1005_s15 = smov %s782_s16 }
  0xb8   : > { %p19_p10 = scmp.ge.s32.totalorder %s22_s20, 4   ;;  %s1006_s16 = smov %s786_s17 }
  0xb9   : > { %s1007_s17 = smov %s924_s9  ;;  %s1008_s18 = smov %s794_s19 }
  0xba   : > { %s1009_s19 = smov %s1011_s27  ;;  %21 = sbr.rel (!%p19_p10) target bundleno = 8 (0x8), region = 96 }
  0xbf   :  { %369 = vsyncpa [#allocation3], 1 }
  0xc0   :  { %371 = vsyncpa [#allocation3 + $0x1], 1 }
  0xc1   :  { %372 = vsyncpa [#allocation6], 1 }
  0xc2   :  { %373 = vsyncpa [#allocation9], 1 }
  0xc3   :  { %374 = vsyncpa [#allocation4], 1 }
  0xc4   :  { %376 = vsyncpa [#allocation4 + $0x1], 1 }

</bundles_post_ra>
